<compile_context>
chip_gen: v7x
topology: tpu7x:2x2x1
jax: 0.10.0
libtpu: 0.0.40
codegen_flags: <defaults>
</compile_context>

<pallas_src>
import functools

import jax
import jax.numpy as jnp
import numpy as np
from jax.experimental import pallas as pl
from jax.experimental.pallas import tpu as pltpu


def _round_up(n, m):
    return ((n + m - 1) // m) * m


def _level_geometry(h, w, num_levels):
    """PyTorch SPP geometry: kernel = dim // 2**i, stride = kernel."""
    geo = []
    for i in range(num_levels):
        kh = h // (2 ** i)
        kw = w // (2 ** i)
        if kh <= 0 or kw <= 0:
            raise ValueError(
                f"SPP level {i} requires H >= 2**{i} and W >= 2**{i}; "
                f"got H={h}, W={w}")
        geo.append((kh, kw, h // kh, w // kw))  # (kh, kw, oh, ow)
    return geo


def _make_spp_kernel(geo, is_max, compute_dtype):
    """Build the Pallas kernel body for a channels-last (tb, h, w, c) block."""
    num_levels = len(geo)

    def _pool_cells(t, oh, kh, ow, kw):
        # (tb, oh*kh, ow*kw, c) -> (tb, oh, ow, c).
        tb, _, wcur, cc = t.shape
        # H split touches an outer (non-tiled) dim -> layout-free; the reduce
        # is elementwise max/add across whole vregs (pure VPU, no XLU).
        t = t.reshape(tb, oh, kh, wcur, cc)
        t = jnp.max(t, axis=2) if is_max else jnp.sum(t, axis=2)
        # W (sublane) group reduce.  [R7] Kept as reshape+reduce (proven
        # lowering); audit the Mosaic dump and switch to strided-pairwise
        # slices (t[:, :, 0::2, :] op t[:, :, 1::2, :]) if relayout copies
        # show up here.
        t = t.reshape(tb, oh, ow, kw, cc)
        if is_max:
            return jnp.max(t, axis=3)
        return jnp.sum(t, axis=3) * (1.0 / float(kh * kw))

    def _halve_cells(t):
        # (tb, 2g, 2g', c) -> (tb, g, g', c): merge 2x2 blocks of finer cells.
        tb, gh, gw, cc = t.shape
        t = t.reshape(tb, gh // 2, 2, gw, cc)
        t = jnp.max(t, axis=2) if is_max else jnp.sum(t, axis=2)
        t = t.reshape(tb, gh // 2, gw // 2, 2, cc)
        if is_max:
            return jnp.max(t, axis=3)
        return jnp.sum(t, axis=3) * 0.25   # equal-sized sub-cells -> exact mean

    def kernel(x_ref, *o_refs):
        # x_ref block: (tb, h, w, c) channels-last (C on the 128-lane axis).
        x = x_ref[...]
        if x.dtype != compute_dtype:
            # Single upcast; only taken for avg_pool (f32 accumulation) or
            # non-matching dtypes.  max_pool stays native (bf16 max is exact).
            x = x.astype(compute_dtype)

        levels = [None] * num_levels
        # Finest -> coarsest; reuse the finer grid whenever windows nest 2x2
        # exactly (always true for the divisible case, opportunistic otherwise).
        for i in range(num_levels - 1, -1, -1):
            kh, kw, oh, ow = geo[i]
            nests = (i + 1 < num_levels
                     and kh == 2 * geo[i + 1][0]
                     and kw == 2 * geo[i + 1][1])
            if nests:
                finer = levels[i + 1][:, :2 * oh, :2 * ow, :]
                levels[i] = _halve_cells(finer)
            else:
                # Crop partial windows (torch floor-mode / stride==kernel).
                xc = x[:, :oh * kh, :ow * kw, :]
                levels[i] = _pool_cells(xc, oh, kh, ow, kw)

        # [R8] One output ref per level: full-block, offset-0 stores only.
        for i in range(num_levels):
            o_refs[i][...] = levels[i].astype(o_refs[i].dtype)

    return kernel


def _spp_pallas_nhwc(x_nhwc, num_levels, pool_type, fuse_input):
    """Core pallas_call on channels-last input; returns per-level (B,oh,ow,C)."""
    bs, h, w, c = x_nhwc.shape
    geo = _level_geometry(h, w, num_levels)
    is_max = (pool_type == 'max_pool')
    compute_dtype = x_nhwc.dtype if is_max else np.dtype(jnp.float32)

    # ---- [R2] VMEM budget & residency-aware batch tile ---------------------
    try:
        phys_vmem = int(pltpu.get_tpu_info().vmem_capacity_bytes)
    except Exception:
        phys_vmem = 64 * 1024 * 1024          # conservative: v7x per-TC VMEM
    vmem_limit = int(min(phys_vmem * 3 // 4, 100 * 1024 * 1024))

    c_pad = _round_up(c, 128)                 # [R9] lane padding of the C axis
    w_pad = _round_up(w, 8)                   # sublane padding
    in_row = h * w_pad * c_pad * np.dtype(x_nhwc.dtype).itemsize
    work_row = h * w_pad * c_pad * np.dtype(compute_dtype).itemsize
    out_row = (sum(oh * _round_up(ow, 8) for (_, _, oh, ow) in geo)
               * c_pad * np.dtype(x_nhwc.dtype).itemsize)
    # 2x input (double-buffered DMA) + 2x working slab (copy + reduce
    # intermediates headroom) + 2x output blocks (double-buffered writeback).
    per_row = 2 * in_row + 2 * work_row + 2 * out_row
    budget = max(vmem_limit - (8 << 20), vmem_limit // 2)
    tb = max(1, min(bs, budget // per_row))
    # [R3] keep >= 2 grid steps so v7x's two TensorCores both get work.
    if bs >= 2:
        tb = min(tb, -(-bs // 2))
    # [R4] Note: if even tb=1 overshoots the budget (very large H*W*C on v7x),
    # an H-tiled second grid axis with a finest-level scratch accumulator
    # would be needed; not required for typical SPP feature-map sizes.

    kernel = _make_spp_kernel(geo, is_max, compute_dtype)

    out_shape = tuple(
        jax.ShapeDtypeStruct((bs, oh, ow, c), x_nhwc.dtype)
        for (_, _, oh, ow) in geo)
    out_specs = tuple(
        pl.BlockSpec((tb, oh, ow, c), lambda n: (n, 0, 0, 0))
        for (_, _, oh, ow) in geo)

    # When bs % tb != 0 the last step reads padded batch rows and relies on
    # Pallas masking the out-of-bounds output rows on writeback (benign).
    return pl.pallas_call(
        kernel,
        out_shape=out_shape,
        grid=(pl.cdiv(bs, tb),),
        in_specs=[pl.BlockSpec((tb, h, w, c), lambda n: (n, 0, 0, 0))],
        out_specs=out_specs,
        compiler_params=pltpu.CompilerParams(
            dimension_semantics=("parallel",),
            vmem_limit_bytes=vmem_limit,
            # [R1] allow XLA to fuse the producer (e.g. the NCHW->NHWC
            # transpose) into this operand instead of a separate HBM pass.
            allow_input_fusion=[bool(fuse_input)],
        ),
    )(x_nhwc)


def _flatten_torch_order(level_outs, bs, c):
    """Per level: channel-major then row-major cells; concat levels (torch)."""
    parts = []
    for lvl in level_outs:                                    # (bs, oh, ow, c)
        oh, ow = lvl.shape[1], lvl.shape[2]
        parts.append(jnp.transpose(lvl, (0, 3, 1, 2)).reshape(bs, c * oh * ow))
    return jnp.concatenate(parts, axis=-1)


@functools.partial(jax.jit, static_argnames=('num_levels', 'pool_type'))
def spp_layer_nhwc(x_nhwc, num_levels, pool_type='max_pool'):
    """Preferred entry: channels-last (B, H, W, C) input — no transpose at all."""
    bs, h, w, c = x_nhwc.shape
    outs = _spp_pallas_nhwc(x_nhwc, num_levels, pool_type, fuse_input=False)
    return _flatten_torch_order(outs, bs, c)


@functools.partial(jax.jit, static_argnames=('num_levels', 'pool_type'))
def spp_layer(x, num_levels, pool_type='max_pool'):
    """PyTorch-compatible entry: x (B, C, H, W) -> (B, C * sum_i oh_i*ow_i)."""
    bs, c, h, w = x.shape
    # [R1] This transpose is not meant to be a standalone HBM round-trip:
    # allow_input_fusion on the pallas_call lets XLA fold it into the kernel
    # operand.  Producers that can emit NHWC should call spp_layer_nhwc.
    x_nhwc = jnp.transpose(x, (0, 2, 3, 1))
    outs = _spp_pallas_nhwc(x_nhwc, num_levels, pool_type, fuse_input=True)
    return _flatten_torch_order(outs, bs, c)


def spp_reference(x, num_levels, pool_type='max_pool'):
    """Pure-JAX reference matching the PyTorch module semantics (NCHW)."""
    bs, c, h, w = x.shape
    outs = []
    for i in range(num_levels):
        kh = h // (2 ** i)
        kw = w // (2 ** i)
        oh = h // kh
        ow = w // kw
        xr = x[:, :, :oh * kh, :ow * kw].reshape(bs, c, oh, kh, ow, kw)
        if pool_type == 'max_pool':
            t = xr.max(axis=(3, 5))
        else:
            t = xr.mean(axis=(3, 5))
        outs.append(t.reshape(bs, -1))
    return jnp.concatenate(outs, axis=-1)


if __name__ == "__main__":
    key = jax.random.PRNGKey(0)
    bs, c, h, w = 2, 4, 16, 16
    num_levels = 3  # kernels 16, 8, 4 -> 1x1, 2x2, 4x4 cells per channel

    x = jax.random.normal(key, (bs, c, h, w), dtype=jnp.float32)

    # max pooling (fully nested / hierarchical path)
    out_max = jax.block_until_ready(
        spp_layer(x, num_levels=num_levels, pool_type='max_pool'))
    ref_max = spp_reference(x, num_levels, 'max_pool')
    assert out_max.shape == (bs, c * (1 + 4 + 16))
    np.testing.assert_allclose(np.asarray(out_max), np.asarray(ref_max),
                               rtol=1e-6, atol=1e-6)

    # average pooling (f32 accumulation)
    out_avg = jax.block_until_ready(
        spp_layer(x, num_levels=num_levels, pool_type='avg_pool'))
    ref_avg = spp_reference(x, num_levels, 'avg_pool')
    np.testing.assert_allclose(np.asarray(out_avg), np.asarray(ref_avg),
                               rtol=1e-5, atol=1e-5)

    # Preferred channels-last entry (no transpose) must agree exactly.
    out_nhwc = jax.block_until_ready(
        spp_layer_nhwc(jnp.transpose(x, (0, 2, 3, 1)),
                       num_levels=num_levels, pool_type='max_pool'))
    np.testing.assert_allclose(np.asarray(out_nhwc), np.asarray(ref_max),
                               rtol=1e-6, atol=1e-6)

    # bf16 max pooling runs natively in bf16 (exact selection -> exact result).
    xb = x.astype(jnp.bfloat16)
    out_bf16 = jax.block_until_ready(
        spp_layer(xb, num_levels=num_levels, pool_type='max_pool'))
    ref_bf16 = spp_reference(xb.astype(jnp.float32), num_levels,
                             'max_pool').astype(jnp.bfloat16)
    np.testing.assert_array_equal(
        np.asarray(out_bf16.astype(jnp.float32)),
        np.asarray(ref_bf16.astype(jnp.float32)))

    # Non power-of-two spatial dims: exercises the direct-pool fallback plus
    # opportunistic 2x2 nesting reuse between adjacent levels.
    x2 = jax.random.normal(jax.random.PRNGKey(1), (2, 4, 10, 12),
                           dtype=jnp.float32)
    out2 = jax.block_until_ready(spp_layer(x2, num_levels=3,
                                           pool_type='max_pool'))
    ref2 = spp_reference(x2, 3, 'max_pool')
    np.testing.assert_allclose(np.asarray(out2), np.asarray(ref2),
                               rtol=1e-6, atol=1e-6)

    out2a = jax.block_until_ready(spp_layer(x2, num_levels=3,
                                            pool_type='avg_pool'))
    ref2a = spp_reference(x2, 3, 'avg_pool')
    np.testing.assert_allclose(np.asarray(out2a), np.asarray(ref2a),
                               rtol=1e-5, atol=1e-5)

    print("KERNEL_OK")
</pallas_src>

<mosaic_0001>
module attributes {stable_mosaic.version = 11 : i64} {
  func.func @kernel(%arg0: i32, %arg1: memref<1x16x16x4xf32, #tpu.memory_space<vmem>>, %arg2: memref<1x1x1x4xf32, #tpu.memory_space<vmem>>, %arg3: memref<1x2x2x4xf32, #tpu.memory_space<vmem>>, %arg4: memref<1x4x4x4xf32, #tpu.memory_space<vmem>>) attributes {dimension_semantics = [#tpu.dimension_semantics<parallel>], iteration_bounds = array<i64: 2>, scalar_prefetch = 0 : i64, scratch_operands = 0 : i64, tpu.core_type = #tpu.core_type<tc>, window_params = [{transform_indices = @transform_0, window_bounds = array<i64: 1, 16, 16, 4>}, {transform_indices = @transform_1, window_bounds = array<i64: 1, 1, 1, 4>}, {transform_indices = @transform_2, window_bounds = array<i64: 1, 2, 2, 4>}, {transform_indices = @transform_3, window_bounds = array<i64: 1, 4, 4, 4>}]} {
    %c0 = arith.constant 0 : index
    %c0_0 = arith.constant 0 : index
    %c0_1 = arith.constant 0 : index
    %c0_2 = arith.constant 0 : index
    %0 = vector.load %arg1[%c0, %c0_0, %c0_1, %c0_2] : memref<1x16x16x4xf32, #tpu.memory_space<vmem>>, vector<1x16x16x4xf32>
    %1 = vector.shape_cast %0 : vector<1x16x16x4xf32> to vector<1x4x4x16x4xf32>
    %cst = arith.constant dense<0xFF800000> : vector<1x4x16x4xf32>
    %2 = vector.multi_reduction <maximumf>, %1, %cst [2] : vector<1x4x4x16x4xf32> to vector<1x4x16x4xf32>
    %3 = vector.shape_cast %2 : vector<1x4x16x4xf32> to vector<1x4x4x4x4xf32>
    %cst_3 = arith.constant dense<0xFF800000> : vector<1x4x4x4xf32>
    %4 = vector.multi_reduction <maximumf>, %3, %cst_3 [3] : vector<1x4x4x4x4xf32> to vector<1x4x4x4xf32>
    %5 = vector.shape_cast %4 : vector<1x4x4x4xf32> to vector<1x2x2x4x4xf32>
    %cst_4 = arith.constant dense<0xFF800000> : vector<1x2x4x4xf32>
    %6 = vector.multi_reduction <maximumf>, %5, %cst_4 [2] : vector<1x2x2x4x4xf32> to vector<1x2x4x4xf32>
    %7 = vector.shape_cast %6 : vector<1x2x4x4xf32> to vector<1x2x2x2x4xf32>
    %cst_5 = arith.constant dense<0xFF800000> : vector<1x2x2x4xf32>
    %8 = vector.multi_reduction <maximumf>, %7, %cst_5 [3] : vector<1x2x2x2x4xf32> to vector<1x2x2x4xf32>
    %9 = vector.shape_cast %8 : vector<1x2x2x4xf32> to vector<1x1x2x2x4xf32>
    %cst_6 = arith.constant dense<0xFF800000> : vector<1x1x2x4xf32>
    %10 = vector.multi_reduction <maximumf>, %9, %cst_6 [2] : vector<1x1x2x2x4xf32> to vector<1x1x2x4xf32>
    %11 = vector.shape_cast %10 : vector<1x1x2x4xf32> to vector<1x1x1x2x4xf32>
    %cst_7 = arith.constant dense<0xFF800000> : vector<1x1x1x4xf32>
    %12 = vector.multi_reduction <maximumf>, %11, %cst_7 [3] : vector<1x1x1x2x4xf32> to vector<1x1x1x4xf32>
    %c0_8 = arith.constant 0 : index
    %c0_9 = arith.constant 0 : index
    %c0_10 = arith.constant 0 : index
    %c0_11 = arith.constant 0 : index
    %13 = vector.load %arg2[%c0_8, %c0_9, %c0_10, %c0_11] : memref<1x1x1x4xf32, #tpu.memory_space<vmem>>, vector<1x1x1x4xf32>
    tpu.vector_store %arg2[%c0_8, %c0_9, %c0_10, %c0_11], %12 {strides = array<i32>} : memref<1x1x1x4xf32, #tpu.memory_space<vmem>>, vector<1x1x1x4xf32>,
    %c0_12 = arith.constant 0 : index
    %c0_13 = arith.constant 0 : index
    %c0_14 = arith.constant 0 : index
    %c0_15 = arith.constant 0 : index
    %14 = vector.load %arg3[%c0_12, %c0_13, %c0_14, %c0_15] : memref<1x2x2x4xf32, #tpu.memory_space<vmem>>, vector<1x2x2x4xf32>
    tpu.vector_store %arg3[%c0_12, %c0_13, %c0_14, %c0_15], %8 {strides = array<i32>} : memref<1x2x2x4xf32, #tpu.memory_space<vmem>>, vector<1x2x2x4xf32>,
    %c0_16 = arith.constant 0 : index
    %c0_17 = arith.constant 0 : index
    %c0_18 = arith.constant 0 : index
    %c0_19 = arith.constant 0 : index
    %15 = vector.load %arg4[%c0_16, %c0_17, %c0_18, %c0_19] : memref<1x4x4x4xf32, #tpu.memory_space<vmem>>, vector<1x4x4x4xf32>
    tpu.vector_store %arg4[%c0_16, %c0_17, %c0_18, %c0_19], %4 {strides = array<i32>} : memref<1x4x4x4xf32, #tpu.memory_space<vmem>>, vector<1x4x4x4xf32>,
    return
  }
  func.func @transform_0(%arg0: i32) -> (i32, i32, i32, i32) {
    %c0_i32 = arith.constant 0 : i32
    %c0_i32_0 = arith.constant 0 : i32
    %c0_i32_1 = arith.constant 0 : i32
    %c0_i32_2 = arith.constant 0 : i32
    return %arg0, %c0_i32, %c0_i32_0, %c0_i32_1 : i32, i32, i32, i32
  }
  func.func @transform_1(%arg0: i32) -> (i32, i32, i32, i32) {
    %c0_i32 = arith.constant 0 : i32
    %c0_i32_0 = arith.constant 0 : i32
    %c0_i32_1 = arith.constant 0 : i32
    %c0_i32_2 = arith.constant 0 : i32
    return %arg0, %c0_i32, %c0_i32_0, %c0_i32_1 : i32, i32, i32, i32
  }
  func.func @transform_2(%arg0: i32) -> (i32, i32, i32, i32) {
    %c0_i32 = arith.constant 0 : i32
    %c0_i32_0 = arith.constant 0 : i32
    %c0_i32_1 = arith.constant 0 : i32
    %c0_i32_2 = arith.constant 0 : i32
    return %arg0, %c0_i32, %c0_i32_0, %c0_i32_1 : i32, i32, i32, i32
  }
  func.func @transform_3(%arg0: i32) -> (i32, i32, i32, i32) {
    %c0_i32 = arith.constant 0 : i32
    %c0_i32_0 = arith.constant 0 : i32
    %c0_i32_1 = arith.constant 0 : i32
    %c0_i32_2 = arith.constant 0 : i32
    return %arg0, %c0_i32, %c0_i32_0, %c0_i32_1 : i32, i32, i32, i32
  }
}

</mosaic_0001>

<bundles_post_ra>
// kernel: spp_layer.2
= control target key start
LH: loop header
LB: loop body
LE: loop exit
PB: predicated region body
PF: predicated region fallthrough
CT: control target
= control target key end

     0   :  { %s869_s12 = smov 0   ;;  %s1109_s0 = inlined_call_operand.vmem [shape: f32[2,4,16,16], index: 0, kind: input, shape index: {}]   ;;  %s1110_s1 = inlined_call_operand.vmem [shape: f32[2,1,1,4], index: 1, kind: output, shape index: {0}]   ;;  %s1111_s2 = inlined_call_operand.vmem [shape: f32[2,2,2,4], index: 2, kind: output, shape index: {1}]   ;;  %s1112_s3 = inlined_call_operand.vmem [shape: f32[2,4,4,4], index: 3, kind: output, shape index: {2}]  }
   0x1 LB: > { %s786_s13 = sadd.s32 4294967295, %s847_s12   ;;  %p790_p0 = scmp.ge.s32.totalorder %s847_s12, 1  ;;  %s847_s12 = sphi %s869_s12, %s14_s12  }
   0x2   : > { %p142_p1 = scmp.lt.s32.totalorder %s847_s12, 3 }
   0x4   : > { %p143_p2 = pnand %p790_p0, %p142_p1 }
   0x5   : > { %p174_p3 = scmp.lt.s32.totalorder (!%p143_p2), %s786_s13, 1  ;;  %vm382_vm0 = vcmask (!%p143_p2), 31744   ;;  %vm463_vm1 = vcmask (!%p143_p2), 27648   ;;  %vm627_vm2 = vcmask (!%p143_p2), 1041409   ;;  %vm632_vm3 = vcmask (!%p143_p2), 25600  }
   0x6   : > { %146 = sbr.rel (%p143_p2) target bundleno = 80 (0x50), region = 24  ;;  %vm652_vm4 = vcmask (!%p143_p2), 1042434   ;;  %vm654_vm5 = vcmask (!%p143_p2), 1043459   ;;  %vm621_vm6 = vcmask (!%p143_p2), 24576  }
   0xd   : > { %s1114_s13 = smov (!%p174_p3, %s786_s13), 1 }
   0xe   : > { %s830_s14 = sshll.u32 %s1114_s13, 8  ;;  %s831_s18 = sshll.u32 %s1114_s13, 2 }
   0xf   : > { %s883_s17 = scalar_lea.vmem %s1109_s0, %s830_s14  ;;  %s832_s19 = sshll.u32 %s1114_s13, 4 }
  0x10   : > { %v192_v0 = vld [vmem:[%s883_s17] sm:$0xff]  ;;  %v797_v1 = vld [vmem:[%s883_s17 + $0x8] sm:$0xff]  ;;  %v798_v2 = vld [vmem:[%s883_s17 + $0x10] sm:$0xff]  ;;  %s186_s22 = scalar_lea.vmem %s1111_s2, %s831_s18  ;;  %s191_s25 = scalar_lea.vmem %s1112_s3, %s832_s19 }
  0x11   : > { %v799_v3 = vld [vmem:[%s883_s17 + $0x18] sm:$0xff]  ;;  %v800_v4 = vld [vmem:[%s883_s17 + $0x20] sm:$0xff]  ;;  %v801_v5 = vld [vmem:[%s883_s17 + $0x28] sm:$0xff]  ;;  %v383_v6 = vsel %vm382_vm0, %v192_v0, -inf  ;;  %v384_v7 = vsel %vm382_vm0, %v798_v2, -inf  ;;  %v390_v8 = vsel %vm382_vm0, %v797_v1, -inf  ;;  %s181_s28 = scalar_lea.vmem %s1110_s1, %s1114_s13 }
  0x12   : > { %v802_v9 = vld [vmem:[%s883_s17 + $0x30] sm:$0xff]  ;;  %v803_v10 = vld [vmem:[%s883_s17 + $0x38] sm:$0xff]  ;;  %v804_v11 = vld [vmem:[%s883_s17 + $0x40] sm:$0xff]  ;;  %v385_v12 = vmax.f32 %v383_v6, %v384_v7  ;;  %v386_v13 = vsel %vm382_vm0, %v800_v4, -inf  ;;  %v391_v14 = vsel %vm382_vm0, %v799_v3, -inf  ;;  %v393_v15 = vsel %vm382_vm0, %v801_v5, -inf }
  0x13   : > { %v805_v16 = vld [vmem:[%s883_s17 + $0x48] sm:$0xff]  ;;  %v806_v17 = vld [vmem:[%s883_s17 + $0x50] sm:$0xff]  ;;  %v807_v18 = vld [vmem:[%s883_s17 + $0x58] sm:$0xff]  ;;  %v388_v19 = vsel %vm382_vm0, %v802_v9, -inf  ;;  %v392_v20 = vmax.f32 %v390_v8, %v391_v14  ;;  %v395_v21 = vsel %vm382_vm0, %v803_v10, -inf  ;;  %v397_v22 = vsel %vm382_vm0, %v804_v11, -inf }
  0x14   : > { %v808_v23 = vld [vmem:[%s883_s17 + $0x60] sm:$0xff]  ;;  %v809_v24 = vld [vmem:[%s883_s17 + $0x68] sm:$0xff]  ;;  %v810_v25 = vld [vmem:[%s883_s17 + $0x70] sm:$0xff]  ;;  %v387_v26 = vmax.f32 %v385_v12, %v386_v13  ;;  %v398_v27 = vsel %vm382_vm0, %v806_v17, -inf  ;;  %v404_v28 = vsel %vm382_vm0, %v805_v16, -inf  ;;  %v405_v29 = vsel %vm382_vm0, %v807_v18, -inf }
  0x15   : > { %v811_v30 = vld [vmem:[%s883_s17 + $0x78] sm:$0xff]  ;;  %v812_v31 = vld [vmem:[%s883_s17 + $0x80] sm:$0xff]  ;;  %v813_v32 = vld [vmem:[%s883_s17 + $0x88] sm:$0xff]  ;;  %v394_v33 = vmax.f32 %v392_v20, %v393_v15  ;;  %v399_v34 = vmax.f32 %v397_v22, %v398_v27  ;;  %v400_v35 = vsel %vm382_vm0, %v808_v23, -inf  ;;  %v402_v36 = vsel %vm382_vm0, %v810_v25, -inf }
  0x16   : > { %v814_v37 = vld [vmem:[%s883_s17 + $0x90] sm:$0xff]  ;;  %v815_v38 = vld [vmem:[%s883_s17 + $0x98] sm:$0xff]  ;;  %v816_v39 = vld [vmem:[%s883_s17 + $0xa0] sm:$0xff]  ;;  %v389_v40 = vmax.f32 %v387_v26, %v388_v19  ;;  %v406_v41 = vmax.f32 %v404_v28, %v405_v29  ;;  %v407_v42 = vsel %vm382_vm0, %v809_v24, -inf  ;;  %v409_v43 = vsel %vm382_vm0, %v811_v30, -inf }
  0x17   : > { %v817_v44 = vld [vmem:[%s883_s17 + $0xa8] sm:$0xff]  ;;  %v818_v45 = vld [vmem:[%s883_s17 + $0xb0] sm:$0xff]  ;;  %v819_v46 = vld [vmem:[%s883_s17 + $0xb8] sm:$0xff]  ;;  %v396_v47 = vmax.f32 %v394_v33, %v395_v21  ;;  %v401_v48 = vmax.f32 %v399_v34, %v400_v35  ;;  %v411_v49 = vsel %vm382_vm0, %v812_v31, -inf  ;;  %v412_v50 = vsel %vm382_vm0, %v814_v37, -inf }
  0x18   : > { %v820_v51 = vld [vmem:[%s883_s17 + $0xc0] sm:$0xff]  ;;  %v822_v52 = vld [vmem:[%s883_s17 + $0xd0] sm:$0xff]  ;;  %v408_v53 = vmax.f32 %v406_v41, %v407_v42  ;;  %v413_v54 = vmax.f32 %v411_v49, %v412_v50  ;;  %v414_v55 = vsel %vm382_vm0, %v816_v39, -inf  ;;  %v416_v56 = vsel %vm382_vm0, %v818_v45, -inf  ;;  %v821_v57 = vld [vmem:[%s883_s17 + $0xc8] sm:$0xff] }
  0x19   : > { %v823_v58 = vld [vmem:[%s883_s17 + $0xd8] sm:$0xff]  ;;  %v824_v59 = vld [vmem:[%s883_s17 + $0xe0] sm:$0xff]  ;;  %v403_v60 = vmax.f32 %v401_v48, %v402_v36  ;;  %v418_v61 = vsel %vm382_vm0, %v813_v32, -inf  ;;  %v419_v62 = vsel %vm382_vm0, %v815_v38, -inf  ;;  %v421_v63 = vsel %vm382_vm0, %v817_v44, -inf  ;;  %v825_v0 = vld [vmem:[%s883_s17 + $0xe8] sm:$0xff] }
  0x1a   : > { %v826_v1 = vld [vmem:[%s883_s17 + $0xf0] sm:$0xff]  ;;  %v827_v2 = vld [vmem:[%s883_s17 + $0xf8] sm:$0xff]  ;;  %v410_v3 = vmax.f32 %v408_v53, %v409_v43  ;;  %v415_v4 = vmax.f32 %v413_v54, %v414_v55  ;;  %v420_v5 = vmax.f32 %v418_v61, %v419_v62  ;;  %v423_v6 = vsel %vm382_vm0, %v819_v46, -inf }
  0x1b   : > { %v425_v7 = vsel %vm382_vm0, %v820_v51, -inf  ;;  %v426_v8 = vsel %vm382_vm0, %v822_v52, -inf  ;;  %v428_v9 = vsel %vm382_vm0, %v824_v59, -inf  ;;  %v430_v10 = vsel %vm382_vm0, %v826_v1, -inf }
  0x1c   : > { %v945_v11 = vmax.f32 %v415_v4, %v416_v56  ;;  %v422_v12 = vmax.f32 %v420_v5, %v421_v63  ;;  %v427_v13 = vmax.f32 %v425_v7, %v426_v8  ;;  %v432_v14 = vsel %vm382_vm0, %v821_v57, -inf }
  0x1d   : > { %v433_v15 = vsel %vm382_vm0, %v823_v58, -inf  ;;  %v435_v16 = vsel %vm382_vm0, %v825_v0, -inf  ;;  %v437_v17 = vsel %vm382_vm0, %v827_v2, -inf  ;;  %v447_v18 = vcombine.high %v389_v40, %v389_v40 }
  0x1e   : > { %v951_v19 = vmax.f32 %v422_v12, %v423_v6  ;;  %v429_v20 = vmax.f32 %v427_v13, %v428_v9  ;;  %v434_v21 = vmax.f32 %v432_v14, %v433_v15  ;;  %v448_v22 = vcombine.high %v396_v47, %v396_v47 }
  0x1f   : > { %v449_v23 = vcombine.high %v403_v60, %v403_v60  ;;  %v450_v24 = vcombine.high %v410_v3, %v410_v3  ;;  %v451_v25 = vcombine.high %v945_v11, %v945_v11  ;;  %v464_v26 = vsel %vm463_vm1, %v389_v40, -inf }
  0x20   : > { %v956_v27 = vmax.f32 %v429_v20, %v430_v10  ;;  %v436_v28 = vmax.f32 %v434_v21, %v435_v16  ;;  %v452_v29 = vcombine.high %v951_v19, %v951_v19  ;;  %v465_v30 = vrot.slane %v464_v26, 4 }
  0x21   : > { %v471_v31 = vsel %vm463_vm1, %v447_v18, -inf  ;;  %v478_v32 = vsel %vm463_vm1, %v396_v47, -inf  ;;  %v485_v33 = vsel %vm463_vm1, %v448_v22, -inf  ;;  %v492_v34 = vsel %vm463_vm1, %v403_v60, -inf }
  0x22   : > { %v964_v35 = vmax.f32 %v436_v28, %v437_v17  ;;  %v453_v36 = vcombine.high %v956_v27, %v956_v27  ;;  %v466_v37 = vmax.f32 %v464_v26, %v465_v30  ;;  %v472_v38 = vrot.slane %v471_v31, 4 }
  0x23   : > { %v479_v39 = vrot.slane %v478_v32, 4  ;;  %v486_v40 = vrot.slane %v485_v33, 4  ;;  %v493_v41 = vrot.slane %v492_v34, 4  ;;  %v499_v42 = vsel %vm463_vm1, %v449_v23, -inf }
  0x24   : > { %v454_v43 = vcombine.high %v964_v35, %v964_v35  ;;  %v467_v44 = vrot.slane %v466_v37, 2  ;;  %v473_v45 = vmax.f32 %v471_v31, %v472_v38  ;;  %v500_v46 = vrot.slane %v499_v42, 4 }
  0x25   : > { %v480_v47 = vmax.f32 %v478_v32, %v479_v39  ;;  %v487_v48 = vmax.f32 %v485_v33, %v486_v40  ;;  %v494_v49 = vmax.f32 %v492_v34, %v493_v41  ;;  %v506_v50 = vsel %vm463_vm1, %v410_v3, -inf }
  0x26   : > { %v468_v51 = vmax.f32 %v466_v37, %v467_v44  ;;  %v474_v52 = vrot.slane %v473_v45, 2  ;;  %v501_v53 = vmax.f32 %v499_v42, %v500_v46  ;;  %v507_v54 = vrot.slane %v506_v50, 4 }
  0x27   : > { %v481_v55 = vrot.slane %v480_v47, 2  ;;  %v488_v56 = vrot.slane %v487_v48, 2  ;;  %v495_v57 = vrot.slane %v494_v49, 2  ;;  %v513_v58 = vsel %vm463_vm1, %v450_v24, -inf }
  0x28   : > { %v469_v59 = vrot.slane %v468_v51, 1  ;;  %v475_v60 = vmax.f32 %v473_v45, %v474_v52  ;;  %v502_v61 = vrot.slane %v501_v53, 2  ;;  %v508_v62 = vmax.f32 %v506_v50, %v507_v54 }
  0x29   : > { %v482_v63 = vmax.f32 %v480_v47, %v481_v55  ;;  %v489_v0 = vmax.f32 %v487_v48, %v488_v56  ;;  %v496_v1 = vmax.f32 %v494_v49, %v495_v57  ;;  %v514_v2 = vrot.slane %v513_v58, 4 }
  0x2a   : > { %v973_v4 = vmax.f32 %v468_v51, %v469_v59  ;;  %v476_v3 = vrot.slane %v475_v60, 1  ;;  %v503_v5 = vmax.f32 %v501_v53, %v502_v61  ;;  %v509_v6 = vrot.slane %v508_v62, 2 }
  0x2b   : > { %v483_v7 = vrot.slane %v482_v63, 1  ;;  %v490_v8 = vrot.slane %v489_v0, 1  ;;  %v497_v9 = vrot.slane %v496_v1, 1  ;;  %v515_v10 = vmax.f32 %v513_v58, %v514_v2 }
  0x2c   : > { %v975_v12 = vmax.f32 %v475_v60, %v476_v3  ;;  %v504_v13 = vrot.slane %v503_v5, 1  ;;  %v510_v14 = vmax.f32 %v508_v62, %v509_v6  ;;  %v520_v15 = vsel %vm463_vm1, %v945_v11, -inf }
  0x2d   : > { %v979_v16 = vmax.f32 %v482_v63, %v483_v7  ;;  %v981_v17 = vmax.f32 %v489_v0, %v490_v8  ;;  %v983_v18 = vmax.f32 %v496_v1, %v497_v9  ;;  %v516_v20 = vrot.slane %v515_v10, 2 }
  0x2e   : > { %v985_v21 = vmax.f32 %v503_v5, %v504_v13  ;;  %v511_v22 = vrot.slane %v510_v14, 1  ;;  %v521_v23 = vrot.slane %v520_v15, 4  ;;  %v527_v24 = vsel %vm463_vm1, %v451_v25, -inf }
  0x2f   : > { %v517_v26 = vmax.f32 %v515_v10, %v516_v20  ;;  %v528_v28 = vrot.slane %v527_v24, 4  ;;  %v534_v30 = vsel %vm463_vm1, %v951_v19, -inf  ;;  %v541_v11 = vsel %vm463_vm1, %v452_v29, -inf }
  0x30   : > { %v991_v31 = vmax.f32 %v510_v14, %v511_v22  ;;  %v522_v32 = vmax.f32 %v520_v15, %v521_v23  ;;  %v535_v33 = vrot.slane %v534_v30, 4  ;;  %v542_v34 = vrot.slane %v541_v11, 4 }
  0x31   : > { %v518_v37 = vrot.slane %v517_v26, 1  ;;  %v529_v38 = vmax.f32 %v527_v24, %v528_v28  ;;  %v548_v39 = vsel %vm463_vm1, %v956_v27, -inf  ;;  %v555_v40 = vsel %vm463_vm1, %v453_v36, -inf }
  0x32   : > { %v523_v25 = vrot.slane %v522_v32, 2  ;;  %v536_v41 = vmax.f32 %v534_v30, %v535_v33  ;;  %v543_v42 = vmax.f32 %v541_v11, %v542_v34  ;;  %v549_v44 = vrot.slane %v548_v39, 4 }
  0x33   : > { %v996_v45 = vmax.f32 %v517_v26, %v518_v37  ;;  %v530_v19 = vrot.slane %v529_v38, 2  ;;  %v556_v29 = vrot.slane %v555_v40, 4  ;;  %v562_v46 = vsel %vm463_vm1, %v964_v35, -inf }
  0x34   : > { %v524_v47 = vmax.f32 %v522_v32, %v523_v25  ;;  %v537_v48 = vrot.slane %v536_v41, 2  ;;  %v544_v49 = vrot.slane %v543_v42, 2  ;;  %v550_v50 = vmax.f32 %v548_v39, %v549_v44 }
  0x35   : > { %v531_v51 = vmax.f32 %v529_v38, %v530_v19  ;;  %v557_v52 = vmax.f32 %v555_v40, %v556_v29  ;;  %v563_v27 = vrot.slane %v562_v46, 4  ;;  %v569_v36 = vsel %vm463_vm1, %v454_v43, -inf }
  0x36   : > { %v525_v53 = vrot.slane %v524_v47, 1  ;;  %v538_v54 = vmax.f32 %v536_v41, %v537_v48  ;;  %v545_v55 = vmax.f32 %v543_v42, %v544_v49  ;;  %v551_v56 = vrot.slane %v550_v50, 2 }
  0x37   : > { %v532_v57 = vrot.slane %v531_v51, 1  ;;  %v558_v58 = vrot.slane %v557_v52, 2  ;;  %v564_v59 = vmax.f32 %v562_v46, %v563_v27  ;;  %v570_v60 = vrot.slane %v569_v36, 4 }
  0x38   : > { %v1004_v61 = vmax.f32 %v524_v47, %v525_v53  ;;  %v539_v62 = vrot.slane %v538_v54, 1  ;;  %v546_v63 = vrot.slane %v545_v55, 1  ;;  %v552_v0 = vmax.f32 %v550_v50, %v551_v56 }
  0x39   : > { %v1006_v1 = vmax.f32 %v531_v51, %v532_v57  ;;  %v559_v2 = vmax.f32 %v557_v52, %v558_v58  ;;  %v565_v3 = vrot.slane %v564_v59, 2  ;;  %v571_v35 = vmax.f32 %v569_v36, %v570_v60 }
  0x3a   : > { %v1008_v5 = vmax.f32 %v538_v54, %v539_v62  ;;  %v1010_v43 = vmax.f32 %v545_v55, %v546_v63  ;;  %v553_v6 = vrot.slane %v552_v0, 1  ;;  %v576_v7 = vsel %vm382_vm0, %v973_v4, -inf }
  0x3b   : > { %v560_v8 = vrot.slane %v559_v2, 1  ;;  %v566_v9 = vmax.f32 %v564_v59, %v565_v3  ;;  %v572_v10 = vrot.slane %v571_v35, 2  ;;  %v577_v13 = vsel %vm382_vm0, %v983_v18, -inf }
  0x3c   : > { %v1016_v14 = vmax.f32 %v552_v0, %v553_v6  ;;  %v578_v15 = vmax.f32 %v576_v7, %v577_v13  ;;  %v579_v20 = vsel %vm382_vm0, %v975_v12, -inf  ;;  %v580_v22 = vsel %vm382_vm0, %v985_v21, -inf }
  0x3d   : > { %v1022_v23 = vmax.f32 %v559_v2, %v560_v8  ;;  %v567_v24 = vrot.slane %v566_v9, 1  ;;  %v573_v26 = vmax.f32 %v571_v35, %v572_v10  ;;  %v581_v28 = vmax.f32 %v579_v20, %v580_v22 }
  0x3e   : > { %v582_v30 = vsel %vm382_vm0, %v979_v16, -inf  ;;  %v583_v11 = vsel %vm382_vm0, %v991_v31, -inf  ;;  %v585_v32 = vsel %vm382_vm0, %v981_v17, -inf  ;;  %v586_v33 = vsel %vm382_vm0, %v996_v45, -inf }
  0x3f   : > { %v568_v34 = vmax.f32 %v566_v9, %v567_v24  ;;  %v574_v37 = vrot.slane %v573_v26, 1  ;;  %v584_v38 = vmax.f32 %v582_v30, %v583_v11  ;;  %v587_v39 = vmax.f32 %v585_v32, %v586_v33 }
  0x40   : > { %v588_v40 = vsel %vm382_vm0, %v1004_v61, -inf  ;;  %v589_v25 = vsel %vm382_vm0, %v1016_v14, -inf  ;;  %v591_v41 = vsel %vm382_vm0, %v1006_v1, -inf  ;;  %v592_v42 = vsel %vm382_vm0, %v1022_v23, -inf }
  0x41   : > { %v575_v44 = vmax.f32 %v573_v26, %v574_v37  ;;  %v590_v19 = vmax.f32 %v588_v40, %v589_v25  ;;  %v593_v29 = vmax.f32 %v591_v41, %v592_v42  ;;  %v594_v46 = vsel %vm382_vm0, %v1008_v5, -inf }
  0x42   : > { %v595_v47 = vsel %vm382_vm0, %v568_v34, -inf  ;;  %v597_v48 = vsel %vm382_vm0, %v1010_v43, -inf  ;;  %v600_v49 = vsel %vm382_vm0, %v578_v15, -inf  ;;  %v601_v50 = vsel %vm382_vm0, %v581_v28, -inf }
  0x43   : > { %v596_v51 = vmax.f32 %v594_v46, %v595_v47  ;;  %v598_v52 = vsel %vm382_vm0, %v575_v44, -inf  ;;  %v602_v27 = vmax.f32 %v600_v49, %v601_v50  ;;  %v603_v36 = vsel %vm382_vm0, %v584_v38, -inf }
  0x44   : > { %v599_v53 = vmax.f32 %v597_v48, %v598_v52  ;;  %v604_v54 = vsel %vm382_vm0, %v587_v39, -inf  ;;  %v606_v55 = vsel %vm382_vm0, %v590_v19, -inf  ;;  %v607_v56 = vsel %vm382_vm0, %v593_v29, -inf }
  0x45   : > { %v605_v57 = vmax.f32 %v603_v36, %v604_v54  ;;  %v608_v58 = vmax.f32 %v606_v55, %v607_v56  ;;  %v609_v59 = vsel %vm382_vm0, %v596_v51, -inf  ;;  %v612_v60 = vsel %vm382_vm0, %v602_v27, -inf }
  0x46   : > { %v610_v62 = vsel %vm382_vm0, %v599_v53, -inf  ;;  %v651_v63 = vsel %vm627_vm2, %v975_v12, %v973_v4  ;;  %v656_v0 = vsel %vm627_vm2, %v985_v21, %v983_v18  ;;  %v659_v2 = vsel %vm627_vm2, %v1006_v1, %v1004_v61 }
  0x47   : > { %v611_v3 = vmax.f32 %v609_v59, %v610_v62  ;;  %v613_v35 = vsel %vm382_vm0, %v608_v58, -inf  ;;  %v615_v6 = vsel %vm382_vm0, %v605_v57, -inf  ;;  %v628_v7 = vsel %vm627_vm2, %v605_v57, %v602_v27 }
  0x48   : > { %v614_v4 = vmax.f32 %v612_v60, %v613_v35  ;;  %633 = vst.msk [vmem:[%s186_s22] sm:$0x3] %vm632_vm3, %v628_v7  ;;  %v653_v12 = vsel %vm652_vm4, %v979_v16, %v651_v63  ;;  %v657_v18 = vsel %vm652_vm4, %v991_v31, %v656_v0  ;;  %v660_v21 = vsel %vm652_vm4, %v1008_v5, %v659_v2 }
  0x49   : > { %v616_v61 = vsel %vm382_vm0, %v611_v3, -inf  ;;  %v629_v1 = vsel %vm627_vm2, %v611_v3, %v608_v58  ;;  %v655_v8 = vsel %vm654_vm5, %v981_v17, %v653_v12  ;;  %v658_v9 = vsel %vm654_vm5, %v996_v45, %v657_v18 }
  0x4a   : > { %v617_v10 = vmax.f32 %v615_v6, %v616_v61  ;;  %v618_v16 = vsel %vm382_vm0, %v614_v4, -inf  ;;  %634 = vst.msk [vmem:[%s186_s22 + $0x2] sm:$0x3] %vm632_vm3, %v629_v1  ;;  %v661_v31 = vsel %vm654_vm5, %v1010_v43, %v660_v21  ;;  %v662_v5 = vsel %vm627_vm2, %v1022_v23, %v1016_v14 }
  0x4b   : > { %669 = vst.msk [vmem:[%s191_s25] sm:$0xf] %vm463_vm1, %v655_v8  ;;  %670 = vst.msk [vmem:[%s191_s25 + $0x4] sm:$0xf] %vm463_vm1, %v658_v9  ;;  %v663_v17 = vsel %vm652_vm4, %v568_v34, %v662_v5 }
  0x4c   : > { %671 = vst.msk [vmem:[%s191_s25 + $0x8] sm:$0xf] %vm463_vm1, %v661_v31  ;;  %v619_v45 = vsel %vm382_vm0, %v617_v10, -inf  ;;  %v664_v43 = vsel %vm654_vm5, %v575_v44, %v663_v17 }
  0x4d   : > { %v620_v13 = vmax.f32 %v618_v16, %v619_v45  ;;  %672 = vst.msk [vmem:[%s191_s25 + $0xc] sm:$0xf] %vm463_vm1, %v664_v43 }
  0x4f   : > { %622 = vst.msk [vmem:[%s181_s28] sm:$0x1] %vm621_vm6, %v620_v13 }
  0x50 PF: > { %s14_s12 = sadd.s32 1, %s847_s12  }
  0x51   : > { %p11_p4 = scmp.ge.s32.totalorder %s14_s12, 4  }
  0x53   :  { %13 = sbr.rel (!%p11_p4) target bundleno = 1 (0x1), region = 140 }

</bundles_post_ra>
